<compile_context>
chip_gen: v7x
topology: tpu7x:2x2x1
jax: 0.10.0
libtpu: 0.0.40
codegen_flags: <defaults>
</compile_context>

<pallas_src>
import jax
import jax.numpy as jnp
from jax.experimental import pallas as pl
from jax.experimental.pallas import tpu as pltpu


# ---- packed parameter slab: a single (64, 128) f32 VMEM tile ----------------
#   w1 : rows  0:24, cols 0:4    (24, 4)   fc1 weight, PyTorch (out, in) layout
#   w2 : rows 24:60, cols 0:24   (36, 24)  fc2 weight
#   b1 : rows  0:24, col  64     (24, 1)
#   b2 : rows 24:60, col  64     (36, 1)
#   w3 : rows  0:36, col  65     (36, 1)   fc3 weight stored as a column
#   b3 : row   0,    col  66     (1, 1)


def policy_net_kernel(p_ref, x_ref, o_ref):
    x = x_ref[...]                                    # (4, TB), batch on lanes

    w1 = p_ref[0:24, 0:4]                             # (24, 4)
    b1 = p_ref[0:24, 64:65]                           # (24, 1)
    w2 = p_ref[24:60, 0:24]                           # (36, 24)
    b2 = p_ref[24:60, 64:65]                          # (36, 1)
    w3 = p_ref[0:36, 65:66]                           # (36, 1)
    b3 = p_ref[0:1, 66:67]                            # (1, 1)

    # fc1 + ReLU : (24,4) @ (4,TB) -> (24,TB)
    h1 = jnp.maximum(jnp.dot(w1, x, preferred_element_type=jnp.float32) + b1, 0.0)
    # fc2 + ReLU : (36,24) @ (24,TB) -> (36,TB)
    h2 = jnp.maximum(jnp.dot(w2, h1, preferred_element_type=jnp.float32) + b2, 0.0)
    # fc3 (36 -> 1): lane-wide VPU broadcast-multiply + small sublane sum
    logit = jnp.sum(w3 * h2, axis=0, keepdims=True) + b3    # (1, TB)
    # sigmoid via EUP exp + EUP approx reciprocal (keeps the divide off the VPU)
    o_ref[...] = pl.reciprocal(1.0 + jnp.exp(-logit), approx=True)


def policy_net_forward(x, params_slab, *, tb=512):
    """x: (B, 4) float32 (PyTorch nn.Linear convention). Returns (B, 1) float32."""
    B = x.shape[0]
    b_align = ((B + 127) // 128) * 128          # lane-align the batch
    tb = min(tb, b_align)                       # don't over-tile tiny batches
    b_pad = ((b_align + tb - 1) // tb) * tb     # pad so the grid divides evenly
    # (F, B) layout + zero padding of the tail block (padded rows are discarded)
    x_t = jnp.zeros((4, b_pad), jnp.float32).at[:, :B].set(x.T)

    out_t = pl.pallas_call(
        policy_net_kernel,
        out_shape=jax.ShapeDtypeStruct((1, b_pad), jnp.float32),
        grid_spec=pltpu.PrefetchScalarGridSpec(
            num_scalar_prefetch=0,
            grid=(b_pad // tb,),
            in_specs=[
                pl.BlockSpec((64, 128), lambda i: (0, 0)),   # params slab, VMEM-resident
                pl.BlockSpec((4, tb), lambda i: (0, i)),     # x tile (batch on lanes)
            ],
            out_specs=pl.BlockSpec((1, tb), lambda i: (0, i)),  # lane-dense output
        ),
        compiler_params=pltpu.CompilerParams(
            dimension_semantics=("parallel",),               # v7x: 2 TCs share batch axis
            vmem_limit_bytes=32 * 1024 * 1024,               # safe on 64 MiB v7x too
        ),
    )(params_slab, x_t)
    return out_t[:, :B].T                                     # back to (B, 1)


def init_params(key):
    """PyTorch-style init: W (out,in), b (out,), U(-1/sqrt(fan_in), 1/sqrt(fan_in))."""
    def linear(key, fan_in, fan_out):
        kw, kb = jax.random.split(key)
        bound = 1.0 / jnp.sqrt(fan_in)
        w = jax.random.uniform(kw, (fan_out, fan_in), jnp.float32, -bound, bound)
        b = jax.random.uniform(kb, (fan_out,), jnp.float32, -bound, bound)
        return w, b

    k1, k2, k3 = jax.random.split(key, 3)
    w1, b1 = linear(k1, 4, 24)
    w2, b2 = linear(k2, 24, 36)
    w3, b3 = linear(k3, 36, 1)
    return dict(w1=w1, b1=b1, w2=w2, b2=b2, w3=w3, b3=b3)


def pack_params(p):
    """Pack all weights/biases into one (64, 128) f32 slab (layout documented above)."""
    slab = jnp.zeros((64, 128), jnp.float32)
    slab = slab.at[0:24, 0:4].set(p["w1"])
    slab = slab.at[24:60, 0:24].set(p["w2"])
    slab = slab.at[0:24, 64].set(p["b1"])
    slab = slab.at[24:60, 64].set(p["b2"])
    slab = slab.at[0:36, 65].set(p["w3"][0])   # fc3 weight as a column
    slab = slab.at[0, 66].set(p["b3"][0])
    return slab


def reference_forward(x, p):
    h1 = jnp.maximum(x @ p["w1"].T + p["b1"], 0.0)
    h2 = jnp.maximum(h1 @ p["w2"].T + p["b2"], 0.0)
    return jax.nn.sigmoid(h2 @ p["w3"].T + p["b3"])


if __name__ == "__main__":
    key = jax.random.PRNGKey(0)
    kx, kp = jax.random.split(key)

    B = 8  # small batch of 4-dim observations (CartPole-style state)
    x = jax.random.normal(kx, (B, 4), jnp.float32)
    params = init_params(kp)
    slab = pack_params(params)

    out = policy_net_forward(x, slab)
    out = jax.block_until_ready(out)

    ref = reference_forward(x, params)
    assert out.shape == (B, 1)
    # approx (EUP) reciprocal in the sigmoid -> allow a few e-4 of slack
    assert jnp.allclose(out, ref, atol=5e-3, rtol=0.0), "mismatch vs reference"

    print("KERNEL_OK")
</pallas_src>

<mosaic_0001>
module attributes {stable_mosaic.version = 11 : i64} {
  func.func @policy_net_kernel(%arg0: i32, %arg1: memref<64x128xf32, #tpu.memory_space<vmem>>, %arg2: memref<4x128xf32, #tpu.memory_space<vmem>>, %arg3: memref<1x128xf32, #tpu.memory_space<vmem>>) attributes {dimension_semantics = [#tpu.dimension_semantics<parallel>], iteration_bounds = array<i64: 1>, scalar_prefetch = 0 : i64, scratch_operands = 0 : i64, tpu.core_type = #tpu.core_type<tc>, window_params = [{pipeline_mode = #tpu.pipeline_mode<synchronous>, transform_indices = @transform_0, window_bounds = array<i64: 64, 128>}, {transform_indices = @transform_1, window_bounds = array<i64: 4, 128>}, {transform_indices = @transform_2, window_bounds = array<i64: 1, 128>}]} {
    %c0 = arith.constant 0 : index
    %c0_0 = arith.constant 0 : index
    %0 = vector.load %arg2[%c0, %c0_0] : memref<4x128xf32, #tpu.memory_space<vmem>>, vector<4x128xf32>
    %c0_1 = arith.constant 0 : index
    %c0_2 = arith.constant 0 : index
    %1 = vector.load %arg1[%c0_1, %c0_2] : memref<64x128xf32, #tpu.memory_space<vmem>>, vector<24x4xf32>
    %c0_3 = arith.constant 0 : index
    %c64 = arith.constant 64 : index
    %2 = vector.load %arg1[%c0_3, %c64] : memref<64x128xf32, #tpu.memory_space<vmem>>, vector<24x1xf32>
    %c24 = arith.constant 24 : index
    %c0_4 = arith.constant 0 : index
    %3 = vector.load %arg1[%c24, %c0_4] : memref<64x128xf32, #tpu.memory_space<vmem>>, vector<36x24xf32>
    %c24_5 = arith.constant 24 : index
    %c64_6 = arith.constant 64 : index
    %4 = vector.load %arg1[%c24_5, %c64_6] : memref<64x128xf32, #tpu.memory_space<vmem>>, vector<36x1xf32>
    %c0_7 = arith.constant 0 : index
    %c65 = arith.constant 65 : index
    %5 = vector.load %arg1[%c0_7, %c65] : memref<64x128xf32, #tpu.memory_space<vmem>>, vector<36x1xf32>
    %c0_8 = arith.constant 0 : index
    %c66 = arith.constant 66 : index
    %6 = vector.load %arg1[%c0_8, %c66] : memref<64x128xf32, #tpu.memory_space<vmem>>, vector<1x1xf32>
    %cst = arith.constant dense<0.000000e+00> : vector<24x128xf32>
    %7 = tpu.matmul %1, %0, %cst {dimension_numbers = #tpu.dot_dimension_numbers<[1], [0], [0], [1], [0, 0, 1, 1], [], []>} : vector<24x4xf32>, vector<4x128xf32>, vector<24x128xf32> -> vector<24x128xf32>
    %8 = vector.broadcast %2 : vector<24x1xf32> to vector<24x128xf32>
    %9 = arith.addf %7, %8 : vector<24x128xf32>
    %cst_9 = arith.constant 0.000000e+00 : f32
    %10 = vector.broadcast %cst_9 : f32 to vector<24x128xf32>
    %11 = arith.maximumf %9, %10 : vector<24x128xf32>
    %cst_10 = arith.constant dense<0.000000e+00> : vector<36x128xf32>
    %12 = tpu.matmul %3, %11, %cst_10 {dimension_numbers = #tpu.dot_dimension_numbers<[1], [0], [0], [1], [0, 0, 1, 1], [], []>} : vector<36x24xf32>, vector<24x128xf32>, vector<36x128xf32> -> vector<36x128xf32>
    %13 = vector.broadcast %4 : vector<36x1xf32> to vector<36x128xf32>
    %14 = arith.addf %12, %13 : vector<36x128xf32>
    %cst_11 = arith.constant 0.000000e+00 : f32
    %15 = vector.broadcast %cst_11 : f32 to vector<36x128xf32>
    %16 = arith.maximumf %14, %15 : vector<36x128xf32>
    %17 = vector.broadcast %5 : vector<36x1xf32> to vector<36x128xf32>
    %18 = arith.mulf %17, %16 : vector<36x128xf32>
    %cst_12 = arith.constant dense<0.000000e+00> : vector<128xf32>
    %19 = vector.multi_reduction <add>, %18, %cst_12 [0] : vector<36x128xf32> to vector<128xf32>
    %20 = vector.shape_cast %19 : vector<128xf32> to vector<1x128xf32>
    %21 = vector.broadcast %6 : vector<1x1xf32> to vector<1x128xf32>
    %22 = arith.addf %20, %21 : vector<1x128xf32>
    %cst_13 = arith.constant 0.000000e+00 : f32
    %23 = vector.broadcast %cst_13 : f32 to vector<1x128xf32>
    %24 = arith.subf %23, %22 : vector<1x128xf32>
    %25 = math.exp %24 : vector<1x128xf32>
    %cst_14 = arith.constant 1.000000e+00 : f32
    %26 = vector.broadcast %cst_14 : f32 to vector<1x128xf32>
    %27 = arith.addf %26, %25 : vector<1x128xf32>
    %28 = tpu.reciprocal %27 {approx = true} : vector<1x128xf32> -> vector<1x128xf32>
    %c0_15 = arith.constant 0 : index
    %c0_16 = arith.constant 0 : index
    %29 = vector.load %arg3[%c0_15, %c0_16] : memref<1x128xf32, #tpu.memory_space<vmem>>, vector<1x128xf32>
    tpu.vector_store %arg3[%c0_15, %c0_16], %28 {strides = array<i32>} : memref<1x128xf32, #tpu.memory_space<vmem>>, vector<1x128xf32>,
    return
  }
  func.func @transform_0(%arg0: i32) -> (i32, i32) {
    %c0_i32 = arith.constant 0 : i32
    %c0_i32_0 = arith.constant 0 : i32
    %c0_i32_1 = arith.constant 0 : i32
    return %c0_i32, %c0_i32_0 : i32, i32
  }
  func.func @transform_1(%arg0: i32) -> (i32, i32) {
    %c0_i32 = arith.constant 0 : i32
    %c0_i32_0 = arith.constant 0 : i32
    return %c0_i32, %arg0 : i32, i32
  }
  func.func @transform_2(%arg0: i32) -> (i32, i32) {
    %c0_i32 = arith.constant 0 : i32
    %c0_i32_0 = arith.constant 0 : i32
    return %c0_i32, %arg0 : i32, i32
  }
}

</mosaic_0001>

<bundles_post_ra>
// kernel: tpu_custom_call.1
= control target key start
LH: loop header
LB: loop body
LE: loop exit
PB: predicated region body
PF: predicated region fallthrough
CT: control target
= control target key end

     0   :  { %7 = vsyncpa [#allocation3], 0  ;;  %s594_s0 = inlined_call_operand.hbm [shape: f32[64,128], index: 0, kind: input, shape index: {}]   ;;  %s595_s1 = inlined_call_operand.hbm [shape: f32[4,128], index: 1, kind: input, shape index: {}]   ;;  %s596_s2 = inlined_call_operand.hbm [shape: f32[1,128], index: 2, kind: output, shape index: {}]  }
   0x1   :  { %8 = vsyncpa [#allocation6], 0 }
   0x2   :  { %9 = vsyncpa [#allocation4], 0  ;;  %s508_s9 = smov [#allocation2]   ;;  %s436_s13 = scalar_lea.hbm %s594_s0, 1024 }
   0x3   :  { %s15_s10 = sshll.u32 %s508_s9, 4  ;;  %p437_p0 = scmp.ne.s32.totalorder %s594_s0, %s436_s13  ;;  %s16_s10 = int_to_ptr.vmem [resolvable:$true] %s15_s10 }
   0x4   :  { %p440_p1 = scmp.lt.u32.totalorder %s436_s13, %s594_s0 }
   0x6   :  { %p442_p2 = pnand %p440_p1, %p437_p0 }
   0x8   :  { %445 = shalt.err (!%p442_p2)
}
   0x9   :  { %s446_s18 = scalar_lea.vmem %s16_s10, 1024  ;;  %p451_p4 = scmp.lt.s32.totalorder %s16_s10, %s16_s10 }
   0xa   :  { %p447_p3 = scmp.ne.s32.totalorder %s16_s10, %s446_s18  ;;  %p452_p5 = scmp.lt.s32.totalorder %s446_s18, %s446_s18 }
   0xc   :  { %p453_p6 = por %p452_p5, %p451_p4 }
   0xe   :  { %p454_p7 = pnand %p453_p6, %p447_p3 }
  0x10   :  { %457 = shalt.err (!%p454_p7)
}
  0x11   :  { %s509_s19 = smov 128   ;;  %s510_s20 = smov 8  }
  0x12   :  { %21 = dma.hbm_to_vmem [thread:$0]  %s594_s0, 1024, %s16_s10, [#allocation3], %s509_s19, %s509_s19, %s510_s20  }
  0x13   :  { %s511_s23 = smov [#allocation5]   ;;  %s458_s27 = scalar_lea.hbm %s595_s1, 64 }
  0x14   :  { %s28_s24 = sshll.u32 %s511_s23, 4  ;;  %p459_p8 = scmp.ne.s32.totalorder %s595_s1, %s458_s27  ;;  %s29_s24 = int_to_ptr.vmem [resolvable:$true] %s28_s24 }
  0x15   :  { %p462_p9 = scmp.lt.u32.totalorder %s458_s27, %s595_s1 }
  0x17   :  { %p464_p10 = pnand %p462_p9, %p459_p8 }
  0x19   :  { %467 = shalt.err (!%p464_p10)
}
  0x1a   :  { %s468_s4 = scalar_lea.vmem %s29_s24, 64  ;;  %p473_p12 = scmp.lt.s32.totalorder %s29_s24, %s29_s24 }
  0x1b   :  { %p469_p11 = scmp.ne.s32.totalorder %s29_s24, %s468_s4  ;;  %p474_p13 = scmp.lt.s32.totalorder %s468_s4, %s468_s4 }
  0x1d   :  { %p475_p0 = por %p474_p13, %p473_p12 }
  0x1f   :  { %p476_p1 = pnand %p475_p0, %p469_p11 }
  0x21   :  { %479 = shalt.err (!%p476_p1)
}
  0x22   :  { %31 = dma.hbm_to_vmem [thread:$0]  %s595_s1, 64, %s29_s24, [#allocation6]  }
  0x23   :  { %502 = dma.done.wait [#allocation3], 1024  }
  0x24   :  { %503 = vsyncadd [#allocation3], 4294966272 }
  0x25   :  { %504 = dma.done.wait [#allocation6], 64  }
  0x26   :  { %505 = vsyncadd [#allocation6], 4294967232  ;;  %v512_v0 = vmov 0.0   ;;  %vm513_vm0 = vmmov 0   ;;  %v514_v1 = vmov 64   ;;  %vm71_vm1 = vcmask 1043456  }
  0x27   :  { %375 = vmatprep.subr.mxu0 %v512_v0  ;;  %377 = vmatprep.mubr.msk.f32.mxu0 %vm513_vm0, %v512_v0  ;;  %vm64_vm2 = vcmask 31744   ;;  %v38_v2 = vld [vmem:[#allocation5] sm:$0xf]  ;;  %v41_v4 = vld [vmem:[#allocation2 + $0x10] sm:$0xff]  ;;  %v40_v5 = vld [vmem:[#allocation2 + $0x8] sm:$0xff]  ;;  %v515_v10 = vmov 0.0|0.0  }
  0x28   :  { %425 = vset.pattern.permute.xlu0 %v514_v1  ;;  %426 = vset.pattern.permute.xlu1 %v514_v1  ;;  %v39_v3 = vld [vmem:[#allocation2] sm:$0xff]  ;;  %v42_v6 = vld [vmem:[#allocation2 + $0x18] sm:$0xff]  ;;  %v44_v8 = vld [vmem:[#allocation2 + $0x28] sm:$0xff]  ;;  %v516_v11 = vmov 65   ;;  %v517_v14 = vmov 66   ;;  %vm183_vm3 = vcmask 195584  }
  0x29   :  { %395 = vmatprep.mubr.msk.f32.mxu1 %vm513_vm0, %v512_v0  ;;  %376 = vmatpush3.msk.msra.mxu0 %vm71_vm1, %v38_v2  ;;  %v43_v7 = vld [vmem:[#allocation2 + $0x20] sm:$0xff]  ;;  %v45_v9 = vld [vmem:[#allocation2 + $0x30] sm:$0xff]  ;;  %v46_v12 = vld [vmem:[#allocation2 + $0x38] sm:$0xf]  ;;  %s518_s1 = smov [#allocation7]  }
  0x2a   :  { %51 = vperm.xlu0 %425, %v39_v3   ;;  %378 = vmatmul.mubr.msk.f32.vlgmr.msra.gmra.mrb[0].mxu0 %vm64_vm2, %v39_v3  ;;  %v48_v13 = vld [vmem:[#allocation2] sm:$0x1]  ;;  %s344_s6 = sshll.u32 %s518_s1, 4  ;;  %s345_s6 = int_to_ptr.vmem [resolvable:$true] %s344_s6 }
  0x2b   :  { %61 = vperm.xlu1 %426, %v41_v4   ;;  %380 = vmatprep.mubr.msk.f32.mxu0 %vm513_vm0, %v512_v0  ;;  %v47_v15 = vld [vmem:[#allocation2 + $0x20] sm:$0xf]  ;;  %s480_s7 = scalar_lea.vmem %s345_s6, 16  ;;  %s484_s8 = scalar_lea.vmem %s345_s6, 32 }
  0x2c   :  { %410 = vmatprep.subr.bf16.mxu1 %v515_v10  ;;  %407 = vmatprep.subr.bf16.mxu0 %v515_v10  ;;  %p481_p2 = scmp.ne.s32.totalorder %s345_s6, %s480_s7  ;;  %p485_p3 = scmp.lt.s32.totalorder %s345_s6, %s345_s6 }
  0x2d   :  { %p486_p4 = scmp.lt.s32.totalorder %s484_s8, %s480_s7 }
  0x2e   :  { %56 = vperm.xlu0 %425, %v40_v5   ;;  %381 = vmatmul.mubr.msk.f32.gmra.mrb[2].mxu0 %vm64_vm2, %v40_v5 }
  0x2f   :  { %160 = vperm.xlu1 %426, %v42_v6   ;;  %383 = vmatprep.mubr.msk.f32.mxu0 %vm513_vm0, %v512_v0  ;;  %p487_p5 = por %p486_p4, %p485_p3 }
  0x31   :  { %p488_p6 = pnand %p487_p5, %p481_p2 }
  0x32   :  { %165 = vperm.xlu0 %425, %v43_v7   ;;  %384 = vmatmul.mubr.msk.f32.gmra.mrb[4].mxu0 %vm64_vm2, %v41_v4 }
  0x33   :  { %170 = vperm.xlu1 %426, %v44_v8   ;;  %392 = vmatprep.mubr.msk.f32.mxu0 %vm513_vm0, %v512_v0 }
  0x36   :  { %175 = vperm.xlu0 %425, %v45_v9  }
  0x37   :  { %427 = vset.pattern.permute.xlu1 %v516_v11 }
  0x38   :  { %290 = vperm.xlu1 %427, %v39_v3  }
  0x3a   :  { %428 = vset.pattern.permute.xlu0 %v516_v11 }
  0x3b   :  { %294 = vperm.xlu0 %428, %v40_v5  }
  0x3c   :  { %429 = vset.pattern.permute.xlu1 %v514_v1 }
  0x3d   :  { %180 = vperm.xlu1 %429, %v46_v12  }
  0x3f   :  { %302 = vperm.xlu0 %428, %v42_v6  }
  0x41   :  { %430 = vset.pattern.permute.xlu1 %v516_v11 }
  0x42   :  { %298 = vperm.xlu1 %430, %v41_v4  }
  0x43   :  { %431 = vset.pattern.permute.xlu0 %v517_v14 }
  0x44   :  { %328 = vperm.xlu0 %431, %v48_v13  }
  0x46   :  { %307 = vperm.xlu1 %430, %v47_v15  }
  0xa9   :  { %v52_v16 = vpop.permute.xlu0 %51 }
  0xaa   :  { %v62_v26 = vpop.permute.xlu1 %61 }
  0xad   :  { %v57_v20 = vpop.permute.xlu0 %56 }
  0xae   :  { %v161_v32 = vpop.permute.xlu1 %160 }
  0xb1   :  { %v166_v34 = vpop.permute.xlu0 %165 }
  0xb2   :  { %v171_v33 = vpop.permute.xlu1 %170 }
  0xb5   :  { %v176_v36 = vpop.permute.xlu0 %175 }
  0xb7   :  { %v291_v35 = vpop.permute.xlu1 %290 }
  0xba   :  { %v295_v44 = vpop.permute.xlu0 %294 }
  0xbc   :  { %v181_v37 = vpop.permute.xlu1 %180 }
  0xbe   :  { %v303_v59 = vpop.permute.xlu0 %302 }
  0xc1   :  { %v299_v52 = vpop.permute.xlu1 %298 }
  0xc3   :  { %v329_v13 = vpop.permute.xlu0 %328 }
  0xc5   :  { %v308_v4 = vpop.permute.xlu1 %307 }
  0xfd   :  { %v141_v17 = vpop.f32.mrb[0].mxu0 }
  0xfe   :  { %v379_v18 = vpop.f32.mrb[1].mxu0  ;;  %v142_v19 = vadd.f32 %v141_v17, %v52_v16 }
 0x100   :  { %v155_v24 = vmax.f32 %v142_v19, 0.0 }
 0x101   :  { %v146_v21 = vpop.f32.mrb[2].mxu0 }
 0x102   :  { %v147_v22 = vadd.f32 %v146_v21, %v57_v20  ;;  %v382_v23 = vpop.f32.mrb[3].mxu0 }
 0x104   :  { %v156_v25 = vmax.f32 %v147_v22, 0.0 }
 0x105   :  { %v151_v27 = vpop.f32.mrb[4].mxu0 }
 0x106   :  { %v408_v28 = vpack.c.bf16 %v156_v25, %v155_v24  ;;  %v152_v29 = vadd.f32 %v151_v27, %v62_v26  ;;  %v385_v30 = vpop.f32.mrb[5].mxu0 }
 0x108   :  { %v157_v31 = vmax.f32 %v152_v29, 0.0  ;;  %409 = vmatpush3.bf16.msra.mxu0 %v408_v28  ;;  %412 = vmatpush3.bf16.msra.mxu1 %v408_v28 }
 0x109   :  { %390 = vmatprep.subr.mxu0 %v512_v0  ;;  %411 = vmatprep.subr.mxu1 %v512_v0 }
 0x10c   :  { %391 = vmatpush3.msra.mxu0 %v157_v31  ;;  %413 = vmatpush3.msra.mxu1 %v157_v31 }
 0x10d   :  { %393 = vmatmul.mubr.msk.f32.vlgmr.msra.gmra.mrb[6].mxu0 %vm183_vm3, %v42_v6  ;;  %396 = vmatmul.mubr.msk.f32.vlgmr.msra.gmra.mrb[0].mxu1 %vm183_vm3, %v43_v7 }
 0x10e   :  { %398 = vmatprep.mubr.msk.f32.mxu1 %vm513_vm0, %v512_v0 }
 0x111   :  { %399 = vmatmul.mubr.msk.f32.gmra.mrb[2].mxu1 %vm183_vm3, %v44_v8 }
 0x112   :  { %401 = vmatprep.mubr.msk.f32.mxu1 %vm513_vm0, %v512_v0 }
 0x115   :  { %402 = vmatmul.mubr.msk.f32.gmra.mrb[4].mxu1 %vm183_vm3, %v45_v9 }
 0x116   :  { %404 = vmatprep.mubr.msk.f32.mxu1 %vm513_vm0, %v512_v0 }
 0x119   :  { %405 = vmatmul.mubr.msk.f32.gmra.mrb[6].mxu1 %vm183_vm3, %v46_v12 }
 0x1e0   :  { %v260_v38 = vpop.f32.mrb[6].mxu0  ;;  %v265_v39 = vpop.f32.mrb[0].mxu1 }
 0x1e1   :  { %v261_v40 = vadd.f32 %v260_v38, %v161_v32  ;;  %v266_v41 = vadd.f32 %v265_v39, %v166_v34  ;;  %v397_v42 = vpop.f32.mrb[1].mxu1  ;;  %v394_v43 = vpop.f32.mrb[7].mxu0 }
 0x1e3   :  { %v284_v45 = vmax.f32 %v261_v40, 0.0  ;;  %v285_v46 = vmax.f32 %v266_v41, 0.0 }
 0x1e4   :  { %v270_v47 = vpop.f32.mrb[2].mxu1 }
 0x1e5   :  { %v310_v48 = vmul.f32 %v291_v35, %v284_v45  ;;  %v311_v49 = vmul.f32 %v295_v44, %v285_v46  ;;  %v271_v50 = vadd.f32 %v270_v47, %v171_v33  ;;  %v400_v51 = vpop.f32.mrb[3].mxu1 }
 0x1e7   :  { %v315_v53 = vadd.f32 %v311_v49, %v310_v48  ;;  %v286_v54 = vmax.f32 %v271_v50, 0.0 }
 0x1e8   :  { %v275_v55 = vpop.f32.mrb[4].mxu1 }
 0x1e9   :  { %v312_v56 = vmul.f32 %v299_v52, %v286_v54  ;;  %v276_v57 = vadd.f32 %v275_v55, %v176_v36  ;;  %v403_v58 = vpop.f32.mrb[5].mxu1 }
 0x1eb   :  { %v316_v60 = vadd.f32 %v315_v53, %v312_v56  ;;  %v287_v61 = vmax.f32 %v276_v57, 0.0 }
 0x1ec   :  { %v280_v62 = vpop.f32.mrb[6].mxu1 }
 0x1ed   :  { %v313_v63 = vmul.f32 %v303_v59, %v287_v61  ;;  %v281_v0 = vadd.f32 %v280_v62, %v181_v37  ;;  %v406_v1 = vpop.f32.mrb[7].mxu1 }
 0x1ef   :  { %v317_v2 = vadd.f32 %v316_v60, %v313_v63  ;;  %v288_v3 = vmax.f32 %v281_v0, 0.0 }
 0x1f1   :  { %v314_v5 = vmul.f32 %v308_v4, %v288_v3 }
 0x1f3   :  { %v318_v6 = vsel %vm71_vm1, %v314_v5, 0.0 }
 0x1f4   :  { %v319_v7 = vadd.f32 %v318_v6, %v317_v2 }
 0x1f6   :  { %v320_v8 = vrot.slane %v319_v7, 4 }
 0x1f8   :  { %v321_v9 = vadd.f32 %v320_v8, %v319_v7 }
 0x1fa   :  { %v322_v10 = vrot.slane %v321_v9, 2 }
 0x1fc   :  { %v323_v11 = vadd.f32 %v322_v10, %v321_v9 }
 0x1fe   :  { %v324_v12 = vrot.slane %v323_v11, 1 }
 0x200   :  { %v325_v14 = vadd.f32 %v324_v12, %v323_v11 }
 0x202   :  { %v331_v15 = vadd.f32 %v329_v13, %v325_v14 }
 0x204   :  { %v332_v16 = vsub.f32 0.0, %v331_v15 }
 0x206   :  { %v333_v17 = vmul.f32 1.442695, %v332_v16 }
 0x208   :  { %432 = vpow2.f32 %v333_v17 }
 0x212   :  { %v433_v18 = vpop.eup %432 }
 0x213   :  { %v335_v19 = vadd.f32 1.0, %v433_v18 }
 0x215   :  { %434 = vrcp.f32 %v335_v19 }
 0x21f   :  { %v435_v20 = vpop.eup %434 }
 0x220   :  { %337 = vst [vmem:[#allocation7] sm:$0x1] %v435_v20 }
 0x221   :  { %491 = shalt.err (!%p488_p6)
}
 0x222   :  { %s492_s11 = scalar_lea.hbm %s596_s2, 16 }
 0x223   :  { %p493_p7 = scmp.ne.s32.totalorder %s596_s2, %s492_s11  ;;  %p496_p8 = scmp.lt.u32.totalorder %s492_s11, %s596_s2 }
 0x225   :  { %p498_p9 = pnand %p496_p8, %p493_p7 }
 0x227   :  { %501 = shalt.err (!%p498_p9)
}
 0x228   :  { %347 = dma.vmem_to_hbm [thread:$0]  %s345_s6, 16, %s596_s2, [#allocation4]  }
 0x229   :  { %506 = dma.done.wait [#allocation4], 16  }
 0x22a   :  { %507 = vsyncadd [#allocation4], 4294967280 }
 0x22b   :  { %351 = vsyncpa [#allocation3], 1 }
 0x22c   :  { %352 = vsyncpa [#allocation6], 1 }
 0x22d   :  { %353 = vsyncpa [#allocation4], 1 }

</bundles_post_ra>
